<compile_context>
chip_gen: v7x
topology: tpu7x:2x2x1
jax: 0.10.0
libtpu: 0.0.40
codegen_flags: <defaults>
</compile_context>

<pallas_src>
import functools

import jax
import jax.numpy as jnp
from jax import lax
from jax.experimental import pallas as pl
from jax.experimental.pallas import tpu as pltpu

VAR_CLIP = 1e-6  # matches var_clip=1e-06 default


def _round_up(x, m):
    return (x + m - 1) // m * m


def _tqpo_kernel(action_size, obs_ref, scale_ref, shift_ref,
                 w1_ref, b1_ref, w2_ref, b2_ref, wh_ref, bh_ref, out_ref):
    # --- observation normalization (RunningMeanStdModel), precomputed FMA ---
    x = jnp.clip(obs_ref[...] * scale_ref[...] + shift_ref[...], -10.0, 10.0)

    # --- MLP body: Linear -> tanh -> Linear -> tanh ---
    h = jnp.tanh(jnp.dot(x, w1_ref[...],
                         preferred_element_type=jnp.float32) + b1_ref[...])
    h = jnp.tanh(jnp.dot(h, w2_ref[...],
                         preferred_element_type=jnp.float32) + b2_ref[...])

    # --- fused heads: [mu | r_value | c_value | zero-pad] in one 128-lane slab
    y = jnp.dot(h, wh_ref[...],
                preferred_element_type=jnp.float32) + bh_ref[...]
    col = lax.broadcasted_iota(jnp.int32, y.shape, 1)
    out_ref[...] = jnp.where(col < action_size, jnp.tanh(y), y)


def tqpo_forward(params, observation, prev_action, prev_reward, *, tm=256):
    """observation: (T, B, D) float32. Returns (mu, log_std, (r_value, c_value))."""
    del prev_action, prev_reward  # only used by the (absent) LSTM branch
    T, B, D = observation.shape
    N = T * B

    H1 = params["w1"].shape[1]
    H2 = params["w2"].shape[1]
    A = params["wmu"].shape[1]

    # ---- wrapper-side precompute (tiny, once per call) ---------------------
    inv_std = lax.rsqrt(jnp.maximum(params["rms_var"], VAR_CLIP))   # (1, D)
    norm_scale = inv_std
    norm_shift = -params["rms_mean"] * inv_std

    # fused + lane-padded head: [Wmu | Wv | Wc | 0] -> (H2, HP), HP multiple of 128
    HP = _round_up(A + 2, 128)
    w_head = jnp.concatenate([params["wmu"], params["wv"], params["wc"]], axis=1)
    b_head = jnp.concatenate([params["bmu"], params["bv"], params["bc"]], axis=1)
    w_head = jnp.pad(w_head, ((0, 0), (0, HP - (A + 2))))
    b_head = jnp.pad(b_head, ((0, 0), (0, HP - (A + 2))))

    # ---- padded row grid (no divisibility requirement on T*B) --------------
    tm_eff = min(tm, _round_up(N, 8))
    N_pad = _round_up(N, tm_eff)
    obs2 = observation.reshape(N, D)
    if N_pad != N:
        obs2 = jnp.pad(obs2, ((0, N_pad - N), (0, 0)))

    row = lambda i: (i, 0)     # tiled over batch rows
    rep = lambda i: (0, 0)     # replicated (weights / stats) -> kept resident

    in_specs = [
        pl.BlockSpec((tm_eff, D), row),   # obs
        pl.BlockSpec((1, D), rep),        # norm scale (1/std)
        pl.BlockSpec((1, D), rep),        # norm shift (-mean/std)
        pl.BlockSpec((D, H1), rep),       # body W1
        pl.BlockSpec((1, H1), rep),       # body b1
        pl.BlockSpec((H1, H2), rep),      # body W2
        pl.BlockSpec((1, H2), rep),       # body b2
        pl.BlockSpec((H2, HP), rep),      # fused head W
        pl.BlockSpec((1, HP), rep),       # fused head b
    ]
    out_specs = pl.BlockSpec((tm_eff, HP), row)
    out_shape = jax.ShapeDtypeStruct((N_pad, HP), jnp.float32)

    flops = 2 * N_pad * (D * H1 + H1 * H2 + H2 * HP)
    transcendentals = N_pad * (H1 + H2 + HP)
    bytes_accessed = 4 * (N_pad * (D + HP) + 2 * D
                          + D * H1 + H1 + H1 * H2 + H2 + H2 * HP + HP)

    out = pl.pallas_call(
        functools.partial(_tqpo_kernel, A),
        out_shape=out_shape,
        grid=(N_pad // tm_eff,),
        in_specs=in_specs,
        out_specs=out_specs,
        compiler_params=pltpu.CompilerParams(
            dimension_semantics=("parallel",)),
        cost_estimate=pl.CostEstimate(
            flops=flops, transcendentals=transcendentals,
            bytes_accessed=bytes_accessed),
    )(obs2, norm_scale, norm_shift,
      params["w1"], params["b1"], params["w2"], params["b2"],
      w_head, b_head)

    # restore_leading_dims: lead_dim = 2 (both T and B leading dims present)
    out = out[:N]
    mu = out[:, :A].reshape(T, B, A)
    r_value = out[:, A].reshape(T, B)
    c_value = out[:, A + 1].reshape(T, B)
    log_std = jnp.broadcast_to(params["log_std"][None, None, :], (T, B, A))
    return mu, log_std, (r_value, c_value)


def tqpo_forward_ref(params, observation):
    """Pure-JAX reference, faithful to the torch module (divide-by-sqrt form)."""
    T, B, D = observation.shape
    x = observation.reshape(T * B, D)
    var = jnp.maximum(params["rms_var"], VAR_CLIP)
    x = jnp.clip((x - params["rms_mean"]) / jnp.sqrt(var), -10.0, 10.0)
    h = jnp.tanh(x @ params["w1"] + params["b1"])
    h = jnp.tanh(h @ params["w2"] + params["b2"])
    mu = jnp.tanh(h @ params["wmu"] + params["bmu"]).reshape(T, B, -1)
    r_value = (h @ params["wv"] + params["bv"]).reshape(T, B)
    c_value = (h @ params["wc"] + params["bc"]).reshape(T, B)
    log_std = jnp.broadcast_to(params["log_std"][None, None, :], mu.shape)
    return mu, log_std, (r_value, c_value)


def make_params(key, obs_dim, action_size, hidden_sizes, init_log_std=0.0):
    keys = jax.random.split(key, 10)
    H1, H2 = hidden_sizes
    u = lambda k, shp, s: jax.random.uniform(k, shp, jnp.float32, -s, s)
    return {
        # RunningMeanStdModel statistics (deterministic synthetic values)
        "rms_mean": (0.1 * jax.random.normal(keys[0], (1, obs_dim))).astype(jnp.float32),
        "rms_var": jnp.ones((1, obs_dim), jnp.float32)
                   + 0.5 * jax.random.uniform(keys[1], (1, obs_dim), jnp.float32),
        # MLP body
        "w1": u(keys[2], (obs_dim, H1), 0.3), "b1": u(keys[3], (1, H1), 0.1),
        "w2": u(keys[4], (H1, H2), 0.3),      "b2": u(keys[5], (1, H2), 0.1),
        # heads
        "wmu": u(keys[6], (H2, action_size), 0.3), "bmu": jnp.zeros((1, action_size), jnp.float32),
        "wv": u(keys[7], (H2, 1), 0.3),            "bv": jnp.zeros((1, 1), jnp.float32),
        "wc": u(keys[8], (H2, 1), 0.3),            "bc": jnp.zeros((1, 1), jnp.float32),
        "log_std": init_log_std * jnp.ones((action_size,), jnp.float32),
    }


if __name__ == "__main__":
    T, B = 8, 2          # leading time / batch dims
    OBS_DIM = 16         # observation_shape = (16,)
    ACTION = 4
    HIDDEN = (32, 32)    # hidden_sizes

    key = jax.random.PRNGKey(0)
    k_obs, k_act, k_rew, k_par = jax.random.split(key, 4)

    observation = jax.random.normal(k_obs, (T, B, OBS_DIM), jnp.float32)
    prev_action = jax.random.normal(k_act, (T, B, ACTION), jnp.float32)
    prev_reward = jax.random.normal(k_rew, (T, B), jnp.float32)
    params = make_params(k_par, OBS_DIM, ACTION, HIDDEN)

    fwd = jax.jit(functools.partial(tqpo_forward, tm=256))
    mu, log_std, (r_value, c_value) = fwd(params, observation, prev_action, prev_reward)
    jax.block_until_ready((mu, log_std, r_value, c_value))

    mu_r, log_std_r, (r_ref, c_ref) = tqpo_forward_ref(params, observation)
    assert mu.shape == (T, B, ACTION) and log_std.shape == (T, B, ACTION)
    assert r_value.shape == (T, B) and c_value.shape == (T, B)
    assert jnp.allclose(mu, mu_r, atol=1e-4)
    assert jnp.allclose(log_std, log_std_r, atol=1e-6)
    assert jnp.allclose(r_value, r_ref, atol=1e-4)
    assert jnp.allclose(c_value, c_ref, atol=1e-4)

    print("KERNEL_OK")
</pallas_src>

<mosaic_0001>
module attributes {stable_mosaic.version = 11 : i64} {
  func.func @_tqpo_kernel(%arg0: i32, %arg1: memref<16x16xf32, #tpu.memory_space<vmem>>, %arg2: memref<1x16xf32, #tpu.memory_space<vmem>>, %arg3: memref<1x16xf32, #tpu.memory_space<vmem>>, %arg4: memref<16x32xf32, #tpu.memory_space<vmem>>, %arg5: memref<1x32xf32, #tpu.memory_space<vmem>>, %arg6: memref<32x32xf32, #tpu.memory_space<vmem>>, %arg7: memref<1x32xf32, #tpu.memory_space<vmem>>, %arg8: memref<32x128xf32, #tpu.memory_space<vmem>>, %arg9: memref<1x128xf32, #tpu.memory_space<vmem>>, %arg10: memref<16x128xf32, #tpu.memory_space<vmem>>) attributes {dimension_semantics = [#tpu.dimension_semantics<parallel>], iteration_bounds = array<i64: 1>, scalar_prefetch = 0 : i64, scratch_operands = 0 : i64, tpu.core_type = #tpu.core_type<tc>, window_params = [{transform_indices = @transform_0, window_bounds = array<i64: 16, 16>}, {pipeline_mode = #tpu.pipeline_mode<synchronous>, transform_indices = @transform_1, window_bounds = array<i64: 1, 16>}, {pipeline_mode = #tpu.pipeline_mode<synchronous>, transform_indices = @transform_2, window_bounds = array<i64: 1, 16>}, {pipeline_mode = #tpu.pipeline_mode<synchronous>, transform_indices = @transform_3, window_bounds = array<i64: 16, 32>}, {pipeline_mode = #tpu.pipeline_mode<synchronous>, transform_indices = @transform_4, window_bounds = array<i64: 1, 32>}, {pipeline_mode = #tpu.pipeline_mode<synchronous>, transform_indices = @transform_5, window_bounds = array<i64: 32, 32>}, {pipeline_mode = #tpu.pipeline_mode<synchronous>, transform_indices = @transform_6, window_bounds = array<i64: 1, 32>}, {pipeline_mode = #tpu.pipeline_mode<synchronous>, transform_indices = @transform_7, window_bounds = array<i64: 32, 128>}, {pipeline_mode = #tpu.pipeline_mode<synchronous>, transform_indices = @transform_8, window_bounds = array<i64: 1, 128>}, {transform_indices = @transform_9, window_bounds = array<i64: 16, 128>}]} {
    %c0 = arith.constant 0 : index
    %c0_0 = arith.constant 0 : index
    %0 = vector.load %arg1[%c0, %c0_0] : memref<16x16xf32, #tpu.memory_space<vmem>>, vector<16x16xf32>
    %c0_1 = arith.constant 0 : index
    %c0_2 = arith.constant 0 : index
    %1 = vector.load %arg2[%c0_1, %c0_2] : memref<1x16xf32, #tpu.memory_space<vmem>>, vector<1x16xf32>
    %2 = vector.broadcast %1 : vector<1x16xf32> to vector<16x16xf32>
    %3 = arith.mulf %0, %2 : vector<16x16xf32>
    %c0_3 = arith.constant 0 : index
    %c0_4 = arith.constant 0 : index
    %4 = vector.load %arg3[%c0_3, %c0_4] : memref<1x16xf32, #tpu.memory_space<vmem>>, vector<1x16xf32>
    %5 = vector.broadcast %4 : vector<1x16xf32> to vector<16x16xf32>
    %6 = arith.addf %3, %5 : vector<16x16xf32>
    %cst = arith.constant -1.000000e+01 : f32
    %cst_5 = arith.constant 1.000000e+01 : f32
    %7 = vector.broadcast %cst : f32 to vector<16x16xf32>
    %8 = arith.maximumf %7, %6 : vector<16x16xf32>
    %9 = vector.broadcast %cst_5 : f32 to vector<16x16xf32>
    %10 = arith.minimumf %9, %8 : vector<16x16xf32>
    %c0_6 = arith.constant 0 : index
    %c0_7 = arith.constant 0 : index
    %11 = vector.load %arg4[%c0_6, %c0_7] : memref<16x32xf32, #tpu.memory_space<vmem>>, vector<16x32xf32>
    %cst_8 = arith.constant dense<0.000000e+00> : vector<16x32xf32>
    %12 = tpu.matmul %10, %11, %cst_8 {dimension_numbers = #tpu.dot_dimension_numbers<[1], [0], [0], [1], [0, 0, 1, 1], [], []>} : vector<16x16xf32>, vector<16x32xf32>, vector<16x32xf32> -> vector<16x32xf32>
    %c0_9 = arith.constant 0 : index
    %c0_10 = arith.constant 0 : index
    %13 = vector.load %arg5[%c0_9, %c0_10] : memref<1x32xf32, #tpu.memory_space<vmem>>, vector<1x32xf32>
    %14 = vector.broadcast %13 : vector<1x32xf32> to vector<16x32xf32>
    %15 = arith.addf %12, %14 : vector<16x32xf32>
    %16 = math.tanh %15 : vector<16x32xf32>
    %c0_11 = arith.constant 0 : index
    %c0_12 = arith.constant 0 : index
    %17 = vector.load %arg6[%c0_11, %c0_12] : memref<32x32xf32, #tpu.memory_space<vmem>>, vector<32x32xf32>
    %cst_13 = arith.constant dense<0.000000e+00> : vector<16x32xf32>
    %18 = tpu.matmul %16, %17, %cst_13 {dimension_numbers = #tpu.dot_dimension_numbers<[1], [0], [0], [1], [0, 0, 1, 1], [], []>} : vector<16x32xf32>, vector<32x32xf32>, vector<16x32xf32> -> vector<16x32xf32>
    %c0_14 = arith.constant 0 : index
    %c0_15 = arith.constant 0 : index
    %19 = vector.load %arg7[%c0_14, %c0_15] : memref<1x32xf32, #tpu.memory_space<vmem>>, vector<1x32xf32>
    %20 = vector.broadcast %19 : vector<1x32xf32> to vector<16x32xf32>
    %21 = arith.addf %18, %20 : vector<16x32xf32>
    %22 = math.tanh %21 : vector<16x32xf32>
    %c0_16 = arith.constant 0 : index
    %c0_17 = arith.constant 0 : index
    %23 = vector.load %arg8[%c0_16, %c0_17] : memref<32x128xf32, #tpu.memory_space<vmem>>, vector<32x128xf32>
    %cst_18 = arith.constant dense<0.000000e+00> : vector<16x128xf32>
    %24 = tpu.matmul %22, %23, %cst_18 {dimension_numbers = #tpu.dot_dimension_numbers<[1], [0], [0], [1], [0, 0, 1, 1], [], []>} : vector<16x32xf32>, vector<32x128xf32>, vector<16x128xf32> -> vector<16x128xf32>
    %c0_19 = arith.constant 0 : index
    %c0_20 = arith.constant 0 : index
    %25 = vector.load %arg9[%c0_19, %c0_20] : memref<1x128xf32, #tpu.memory_space<vmem>>, vector<1x128xf32>
    %26 = vector.broadcast %25 : vector<1x128xf32> to vector<16x128xf32>
    %27 = arith.addf %24, %26 : vector<16x128xf32>
    %28 = tpu.iota {dimensions = array<i32: 1>} : vector<16x128xi32>
    %c4_i32 = arith.constant 4 : i32
    %29 = vector.broadcast %c4_i32 : i32 to vector<16x128xi32>
    %30 = arith.cmpi slt, %28, %29 : vector<16x128xi32>
    %31 = math.tanh %27 : vector<16x128xf32>
    %32 = arith.select %30, %31, %27 : vector<16x128xi1>, vector<16x128xf32>
    %c0_21 = arith.constant 0 : index
    %c0_22 = arith.constant 0 : index
    %33 = vector.load %arg10[%c0_21, %c0_22] : memref<16x128xf32, #tpu.memory_space<vmem>>, vector<16x128xf32>
    tpu.vector_store %arg10[%c0_21, %c0_22], %32 {strides = array<i32>} : memref<16x128xf32, #tpu.memory_space<vmem>>, vector<16x128xf32>,
    return
  }
  func.func @transform_0(%arg0: i32) -> (i32, i32) {
    %c0_i32 = arith.constant 0 : i32
    %c0_i32_0 = arith.constant 0 : i32
    return %arg0, %c0_i32 : i32, i32
  }
  func.func @transform_1(%arg0: i32) -> (i32, i32) {
    %c0_i32 = arith.constant 0 : i32
    %c0_i32_0 = arith.constant 0 : i32
    %c0_i32_1 = arith.constant 0 : i32
    return %c0_i32, %c0_i32_0 : i32, i32
  }
  func.func @transform_2(%arg0: i32) -> (i32, i32) {
    %c0_i32 = arith.constant 0 : i32
    %c0_i32_0 = arith.constant 0 : i32
    %c0_i32_1 = arith.constant 0 : i32
    return %c0_i32, %c0_i32_0 : i32, i32
  }
  func.func @transform_3(%arg0: i32) -> (i32, i32) {
    %c0_i32 = arith.constant 0 : i32
    %c0_i32_0 = arith.constant 0 : i32
    %c0_i32_1 = arith.constant 0 : i32
    return %c0_i32, %c0_i32_0 : i32, i32
  }
  func.func @transform_4(%arg0: i32) -> (i32, i32) {
    %c0_i32 = arith.constant 0 : i32
    %c0_i32_0 = arith.constant 0 : i32
    %c0_i32_1 = arith.constant 0 : i32
    return %c0_i32, %c0_i32_0 : i32, i32
  }
  func.func @transform_5(%arg0: i32) -> (i32, i32) {
    %c0_i32 = arith.constant 0 : i32
    %c0_i32_0 = arith.constant 0 : i32
    %c0_i32_1 = arith.constant 0 : i32
    return %c0_i32, %c0_i32_0 : i32, i32
  }
  func.func @transform_6(%arg0: i32) -> (i32, i32) {
    %c0_i32 = arith.constant 0 : i32
    %c0_i32_0 = arith.constant 0 : i32
    %c0_i32_1 = arith.constant 0 : i32
    return %c0_i32, %c0_i32_0 : i32, i32
  }
  func.func @transform_7(%arg0: i32) -> (i32, i32) {
    %c0_i32 = arith.constant 0 : i32
    %c0_i32_0 = arith.constant 0 : i32
    %c0_i32_1 = arith.constant 0 : i32
    return %c0_i32, %c0_i32_0 : i32, i32
  }
  func.func @transform_8(%arg0: i32) -> (i32, i32) {
    %c0_i32 = arith.constant 0 : i32
    %c0_i32_0 = arith.constant 0 : i32
    %c0_i32_1 = arith.constant 0 : i32
    return %c0_i32, %c0_i32_0 : i32, i32
  }
  func.func @transform_9(%arg0: i32) -> (i32, i32) {
    %c0_i32 = arith.constant 0 : i32
    %c0_i32_0 = arith.constant 0 : i32
    return %arg0, %c0_i32 : i32, i32
  }
}

</mosaic_0001>

<bundles_post_ra>
// kernel: squeeze.2
= control target key start
LH: loop header
LB: loop body
LE: loop exit
PB: predicated region body
PF: predicated region fallthrough
CT: control target
= control target key end

     0   :  { %s66_s8 = smov 122   ;;  %vm7_vm0 = vcmask 15360   ;;  %s67_s11 = smov 124   ;;  %s117_s0 = inlined_call_operand.vmem [shape: f32[16], index: 0, kind: input, shape index: {}]   ;;  %s118_s1 = inlined_call_operand.vmem [shape: f32[8,2], index: 1, kind: output, shape index: {}]  }
   0x1   :  { %v4_v0 = vld [vmem:[%s117_s0] sm:$0x1]  ;;  %s65_s0 = smov 126   ;;  %s68_s12 = smov 120  }
   0x2   :  { %5 = vst [vmem:[#allocation0] sm:$0x1] %v4_v0  ;;  %s69_s13 = smov 118   ;;  %s70_s14 = smov 116  }
   0x3   :  { %s71_s15 = smov 114  }
   0x9   :  { %v9_v1 = vld [vmem:[#allocation0] sm:$0x1]  }
   0xa   :  { %v21_v2 = vld [vmem:[#allocation0] sm:$0x1]   ;;  %10 = vrot.lane.b32.xlu0 %v9_v1, %s65_s0 }
   0xb   :  { %22 = vrot.lane.b32.xlu1 %v21_v2, %s66_s8  ;;  %v15_v3 = vld [vmem:[#allocation0] sm:$0x1]  }
   0xc   :  { %v27_v4 = vld [vmem:[#allocation0] sm:$0x1]  }
   0xd   :  { %v6_v5 = vld [vmem:[#allocation0] sm:$0x1]  }
   0xe   :  { %8 = vst.msk [vmem:[%s118_s1] sm:$0x1] %vm7_vm0, %v6_v5   ;;  %16 = vrot.lane.b32.xlu0 %v15_v3, %s67_s11  ;;  %v33_v6 = vld [vmem:[#allocation0] sm:$0x1]  }
   0xf   :  { %28 = vrot.lane.b32.xlu1 %v27_v4, %s68_s12  ;;  %v39_v7 = vld [vmem:[#allocation0] sm:$0x1]  }
  0x10   :  { %v45_v8 = vld [vmem:[#allocation0] sm:$0x1]  }
  0x12   :  { %34 = vrot.lane.b32.xlu0 %v33_v6, %s69_s13 }
  0x13   :  { %40 = vrot.lane.b32.xlu1 %v39_v7, %s70_s14 }
  0x16   :  { %46 = vrot.lane.b32.xlu0 %v45_v8, %s71_s15 }
  0x7c   :  { %v11_v9 = vpop.permute.xlu0 %10  }
  0x7d   :  { %v23_v10 = vpop.permute.xlu1 %22   ;;  %51 = vst.msk [vmem:[%s118_s1 + $0x1] sm:$0x1] %vm7_vm0, %v11_v9  }
  0x7e   :  { %53 = vst.msk [vmem:[%s118_s1 + $0x3] sm:$0x1] %vm7_vm0, %v23_v10  }
  0x80   :  { %v17_v11 = vpop.permute.xlu0 %16  }
  0x81   :  { %v29_v12 = vpop.permute.xlu1 %28   ;;  %52 = vst.msk [vmem:[%s118_s1 + $0x2] sm:$0x1] %vm7_vm0, %v17_v11  }
  0x82   :  { %54 = vst.msk [vmem:[%s118_s1 + $0x4] sm:$0x1] %vm7_vm0, %v29_v12  }
  0x84   :  { %v35_v13 = vpop.permute.xlu0 %34  }
  0x85   :  { %v41_v14 = vpop.permute.xlu1 %40   ;;  %55 = vst.msk [vmem:[%s118_s1 + $0x5] sm:$0x1] %vm7_vm0, %v35_v13  }
  0x86   :  { %56 = vst.msk [vmem:[%s118_s1 + $0x6] sm:$0x1] %vm7_vm0, %v41_v14  }
  0x88   :  { %v47_v15 = vpop.permute.xlu0 %46  }
  0x89   :  { %57 = vst.msk [vmem:[%s118_s1 + $0x7] sm:$0x1] %vm7_vm0, %v47_v15  }

// kernel: tqpo_forward.1
= control target key start
LH: loop header
LB: loop body
LE: loop exit
PB: predicated region body
PF: predicated region fallthrough
CT: control target
= control target key end

     0   :  { %vm65_vm0 = vcmask 130048   ;;  %vm160_vm1 = vcmask 261120   ;;  %v336_v44 = vlaneseq  ;;  %s550_s3 = inlined_call_operand.vmem [shape: f32[16,32], index: 3, kind: input, shape index: {}]   ;;  %s551_s0 = inlined_call_operand.vmem [shape: f32[16,16], index: 0, kind: input, shape index: {}]   ;;  %s552_s1 = inlined_call_operand.vmem [shape: f32[1,16], index: 1, kind: input, shape index: {}]   ;;  %s553_s2 = inlined_call_operand.vmem [shape: f32[1,16], index: 2, kind: input, shape index: {}]   ;;  %s554_s5 = inlined_call_operand.vmem [shape: f32[32,32], index: 5, kind: input, shape index: {}]   ;;  %s555_s4 = inlined_call_operand.vmem [shape: f32[1,32], index: 4, kind: input, shape index: {}]   ;;  %s556_s7 = inlined_call_operand.vmem [shape: f32[32,128], index: 7, kind: input, shape index: {}]   ;;  %s557_s6 = inlined_call_operand.vmem [shape: f32[1,32], index: 6, kind: input, shape index: {}]   ;;  %s558_s8 = inlined_call_operand.vmem [shape: f32[1,128], index: 8, kind: input, shape index: {}]   ;;  %s559_s9 = inlined_call_operand.vmem [shape: f32[16,128], index: 9, kind: output, shape index: {}]  }
   0x1   :  { %v56_v0 = vld [vmem:[%s550_s3] sm:$0xff]  ;;  %v57_v1 = vld [vmem:[%s550_s3 + $0x8] sm:$0xff]  ;;  %v151_v15 = vld [vmem:[%s554_s5 + $0x10] sm:$0xff] }
   0x2   :  { %v32_v2 = vld [vmem:[%s551_s0] sm:$0xff]  ;;  %v407_v3 = vpack.c.bf16 %v57_v1, %v56_v0  ;;  %v33_v4 = vld [vmem:[%s551_s0 + $0x8] sm:$0xff]  ;;  %v152_v17 = vld [vmem:[%s554_s5 + $0x18] sm:$0xff]  ;;  %v337_v45 = vand.u32 127, %v336_v44 }
   0x3   :  { %v349_v5 = vld [vmem:[%s552_s1] ss:$0 sm:$0xff]  ;;  %v150_v14 = vld [vmem:[%s554_s5 + $0x8] sm:$0xff]  ;;  %v415_v18 = vpack.c.bf16 %v152_v17, %v151_v15  ;;  %v246_v28 = vld [vmem:[%s556_s7 + $0x10] sm:$0xff] }
   0x4   :  { %v350_v6 = vld [vmem:[%s553_s2] ss:$0 sm:$0xff]  ;;  %v41_v7 = vmul.f32 %v349_v5, %v32_v2  ;;  %v42_v8 = vmul.f32 %v349_v5, %v33_v4  ;;  %408 = vmatprep.subr.bf16.mxu0 %v407_v3  ;;  %v245_v27 = vld [vmem:[%s556_s7 + $0x8] sm:$0xff]  ;;  %v247_v30 = vld [vmem:[%s556_s7 + $0x18] sm:$0xff]  ;;  %vm338_vm2 = vcmp.lt.s32.totalorder %v337_v45, 4 }
   0x5   :  { %410 = vmatpush3.bf16.msra.mxu0 %v407_v3  ;;  %v149_v13 = vld [vmem:[%s554_s5] sm:$0xff]  ;;  %v423_v31 = vpack.c.bf16 %v247_v30, %v246_v28 }
   0x6   :  { %v50_v9 = vadd.f32 %v350_v6, %v41_v7  ;;  %v51_v10 = vadd.f32 %v350_v6, %v42_v8  ;;  %v411_v16 = vpack.c.bf16 %v150_v14, %v149_v13  ;;  %v353_v19 = vld [vmem:[%s555_s4] ss:$0 sm:$0xff] }
   0x7   :  { %v244_v26 = vld [vmem:[%s556_s7] sm:$0xff] }
   0x8   :  { %v351_v11 = vclamps-f32 %v50_v9, 10.0  ;;  %v352_v12 = vclamps-f32 %v51_v10, 10.0  ;;  %412 = vmatprep.subr.bf16.mxu1 %v411_v16  ;;  %v419_v29 = vpack.c.bf16 %v245_v27, %v244_v26  ;;  %v356_v32 = vld [vmem:[%s557_s6] ss:$0 sm:$0xff] }
   0x9   :  { %414 = vmatpush3.bf16.msra.mxu1 %v411_v16  ;;  %v359_v39 = vld [vmem:[%s558_s8] ss:$0 sm:$0xff] }
   0xa   :  { %382 = vmatprep.mubr.msk.f32.mxu0 %vm65_vm0, %v351_v11  ;;  %416 = vmatprep.subr.bf16.mxu1 %v415_v18 }
   0xb   :  { %383 = vmatmul.mubr.msk.f32.vlgmr.msra.gmra.mrb[0].mxu0 %vm65_vm0, %v352_v12  ;;  %420 = vmatprep.subr.bf16.mxu0 %v419_v29 }
   0xc   :  { %422 = vmatpush3.bf16.msra.mxu0 %v419_v29 }
   0xd   :  { %418 = vmatpush3.bf16.msra.mxu1 %v415_v18  ;;  %424 = vmatprep.subr.bf16.mxu0 %v423_v31 }
  0x10   :  { %426 = vmatpush3.bf16.msra.mxu0 %v423_v31 }
  0xde   :  { %v384_v20 = vpop.f32.mrb[0].mxu0 }
  0xdf   :  { %v144_v21 = vadd.f32 %v384_v20, %v353_v19  ;;  %v138_v22 = vpop.f32.mrb[1].mxu0 }
  0xe0   :  { %v139_v23 = vadd.f32 %v353_v19, %v138_v22 }
  0xe2   :  { %427 = vtanh.f32 %v139_v23 }
  0xe3   :  { %429 = vtanh.f32 %v144_v21 }
  0xec   :  { %v428_v24 = vpop.eup %427 }
  0xed   :  { %v430_v25 = vpop.eup %429  ;;  %393 = vmatprep.mubr.msk.f32.mxu1 %vm160_vm1, %v428_v24 }
  0xee   :  { %394 = vmatmul.mubr.msk.f32.vlgmr.msra.gmra.mrb[0].mxu1 %vm160_vm1, %v430_v25 }
 0x1c1   :  { %v395_v33 = vpop.f32.mrb[0].mxu1 }
 0x1c2   :  { %v239_v34 = vadd.f32 %v395_v33, %v356_v32  ;;  %v233_v35 = vpop.f32.mrb[1].mxu1 }
 0x1c3   :  { %v234_v36 = vadd.f32 %v356_v32, %v233_v35 }
 0x1c5   :  { %431 = vtanh.f32 %v234_v36 }
 0x1c6   :  { %433 = vtanh.f32 %v239_v34 }
 0x1cf   :  { %v432_v37 = vpop.eup %431 }
 0x1d0   :  { %v434_v38 = vpop.eup %433  ;;  %404 = vmatprep.mubr.msk.f32.mxu0 %vm160_vm1, %v432_v37 }
 0x1d1   :  { %405 = vmatmul.mubr.msk.f32.vlgmr.msra.gmra.mrb[2].mxu0 %vm160_vm1, %v434_v38 }
 0x2a4   :  { %v406_v40 = vpop.f32.mrb[2].mxu0 }
 0x2a5   :  { %v333_v41 = vadd.f32 %v406_v40, %v359_v39  ;;  %v327_v42 = vpop.f32.mrb[3].mxu0 }
 0x2a6   :  { %v328_v43 = vadd.f32 %v359_v39, %v327_v42 }
 0x2a7   :  { %435 = vtanh.f32 %v333_v41 }
 0x2a8   :  { %437 = vtanh.f32 %v328_v43 }
 0x2b1   :  { %v436_v46 = vpop.eup %435 }
 0x2b2   :  { %v438_v47 = vpop.eup %437  ;;  %v342_v48 = vsel %vm338_vm2, %v436_v46, %v333_v41 }
 0x2b3   :  { %344 = vst [vmem:[%s559_s9 + $0x8] sm:$0xff] %v342_v48  ;;  %v341_v49 = vsel %vm338_vm2, %v438_v47, %v328_v43 }
 0x2b4   :  { %343 = vst [vmem:[%s559_s9] sm:$0xff] %v341_v49 }

</bundles_post_ra>
